<compile_context>
chip_gen: v7x
topology: tpu7x:2x2x1
jax: 0.10.0
libtpu: 0.0.40
codegen_flags: <defaults>
</compile_context>

<pallas_src>
import functools
import math

import jax
import jax.numpy as jnp
from jax import lax
from jax.experimental import pallas as pl
from jax.experimental.pallas import tpu as pltpu


def _round_up(v, m):
    return (v + m - 1) // m * m


def _multi_tensorcore_chip():
    # v7x has 2 TensorCores per chip (v4/v5p megacore similar); v5e/v6e have 1.
    try:
        kind = jax.devices()[0].device_kind.lower()
    except Exception:
        return False
    return any(tag in kind for tag in ("v4", "v5p", "7"))


def _sepconv_kernel(x_ref, dw_ref, pw_ref, o_ref, *, ksize, dilation, wp):
    # x_ref : (1, C,  Lin)  flattened padded input block, C = Bblk*Cin
    # dw_ref: (C, K*K)      depthwise weight columns (VMEM, f32)
    # pw_ref: (Co, C)       block-diag pointwise weights (VMEM, f32), Co = Bblk*Cout
    # o_ref : (1, Co, Lout) flattened dense output, Lout = Ho*Wp (mult. of 128)
    lout = o_ref.shape[-1]

    # ---- Depthwise conv: K*K lane-dense (C, Lout) FMAs on the VPU. ----
    # Flat offset of tap (kh, kw) in the row-major padded image is
    # (kh*Wp + kw)*dilation; each tap slice comes straight from the ref so the
    # whole (C, Lin) block never sits in vregs, and the (C, 1) weight column
    # broadcasts across lanes (no SMEM scalar splats, no sublane extracts).
    acc = None
    for kh in range(ksize):
        for kw in range(ksize):
            off = (kh * wp + kw) * dilation
            idx = kh * ksize + kw
            tap = x_ref[0, :, off:off + lout].astype(jnp.float32)   # (C, Lout)
            term = dw_ref[:, idx:idx + 1] * tap                     # (C,1)*(C,L)
            acc = term if acc is None else acc + term

    # ---- Pointwise 1x1 conv: one tiny MXU matmul (off the VALU/XLU path). ----
    out = jnp.dot(pw_ref[...], acc, preferred_element_type=jnp.float32)
    # Single lane-dense store in the output dtype (Lout % 128 == 0).
    o_ref[0] = out.astype(o_ref.dtype)


def separable_conv2d(x, dw_weight, pw_weight, *, stride=1, padding=0, dilation=1):
    """x: (N, Cin, H, W); dw_weight: (Cin, 1, K, K); pw_weight: (Cout, Cin, 1, 1)."""
    n, cin, h, w = x.shape
    k = dw_weight.shape[-1]
    cout = pw_weight.shape[0]

    # Strided output size (what the module returns) ...
    ho = (h + 2 * padding - dilation * (k - 1) - 1) // stride + 1
    wo = (w + 2 * padding - dilation * (k - 1) - 1) // stride + 1
    # ... and the dense (stride-1) row count the kernel computes.
    ho1 = h + 2 * padding - dilation * (k - 1)

    # Lane-dense layout: padded width wp so Lout = ho1*wp is a multiple of 128.
    wp_min = w + 2 * padding
    wp = _round_up(wp_min, 128 // math.gcd(ho1, 128))
    lout = ho1 * wp

    hp = h + 2 * padding
    # Largest tap read is (k-1)*dilation past the last dense output position.
    lin = _round_up(hp * wp + (k - 1) * dilation, 128)

    # Batch elements packed per grid step:
    #   single-TC chips -> all of them (one 8-sublane-dense step, no per-step
    #   pipeline overhead);  multi-TC chips -> one each, sharded across cores.
    bblk = 1 if (_multi_tensorcore_chip() and n > 1) else n

    # Wrapper-side glue: zero-pad, flatten spatial dims to one lane-dense axis,
    # pack bblk batch elements into the sublane (channel) axis.
    xp = jnp.pad(x, ((0, 0), (0, 0),
                     (padding, padding),
                     (padding, wp - w - padding)))
    xflat = xp.reshape(n, cin, hp * wp)
    xflat = jnp.pad(xflat, ((0, 0), (0, 0), (0, lin - hp * wp)))
    xflat = xflat.reshape(n // bblk, bblk * cin, lin)

    # Depthwise weight columns (tiled across the packed batch) and the
    # block-diagonal pointwise matrix, both small VMEM inputs in f32.
    dw = jnp.tile(dw_weight.reshape(cin, k * k).astype(jnp.float32), (bblk, 1))
    pw = jnp.kron(jnp.eye(bblk, dtype=jnp.float32),
                  pw_weight.reshape(cout, cin).astype(jnp.float32))

    kernel = functools.partial(_sepconv_kernel, ksize=k, dilation=dilation, wp=wp)

    out_flat = pl.pallas_call(
        kernel,
        out_shape=jax.ShapeDtypeStruct((n // bblk, bblk * cout, lout), x.dtype),
        grid_spec=pltpu.PrefetchScalarGridSpec(
            num_scalar_prefetch=0,
            grid=(n // bblk,),
            in_specs=[
                pl.BlockSpec((1, bblk * cin, lin), lambda b: (b, 0, 0)),
                pl.BlockSpec((bblk * cin, k * k), lambda b: (0, 0)),      # dw cols
                pl.BlockSpec((bblk * cout, bblk * cin), lambda b: (0, 0)),  # pw
            ],
            out_specs=pl.BlockSpec((1, bblk * cout, lout), lambda b: (b, 0, 0)),
        ),
        compiler_params=pltpu.CompilerParams(
            dimension_semantics=("parallel",),
        ),
    )(xflat, dw, pw)

    # Un-flatten, subsample for stride, and crop lane-alignment columns.
    out = out_flat.reshape(n, cout, ho1, wp)
    # TODO(synk): stride > 1 currently computes the dense grid and subsamples
    # here; fold the stride into the wp/Lout layout if strided configs matter.
    out = out[:, :, ::stride, ::stride][:, :, :ho, :wo]
    return out


def _reference(x, dw_weight, pw_weight, *, stride, padding, dilation):
    cin = x.shape[1]
    y = lax.conv_general_dilated(
        x, dw_weight,
        window_strides=(stride, stride),
        padding=((padding, padding), (padding, padding)),
        rhs_dilation=(dilation, dilation),
        dimension_numbers=("NCHW", "OIHW", "NCHW"),
        feature_group_count=cin)
    y = lax.conv_general_dilated(
        y, pw_weight,
        window_strides=(1, 1),
        padding=((0, 0), (0, 0)),
        dimension_numbers=("NCHW", "OIHW", "NCHW"))
    return y


if __name__ == "__main__":
    # Module config (Xception-style separable conv; bias=False).
    in_channels, out_channels = 4, 8
    kernel_size, stride, padding, dilation = 3, 1, 1, 1

    key = jax.random.PRNGKey(0)
    kx, kdw, kpw = jax.random.split(key, 3)

    x = jax.random.normal(kx, (2, in_channels, 16, 16), dtype=jnp.float32)
    dw_weight = jax.random.normal(
        kdw, (in_channels, 1, kernel_size, kernel_size), dtype=jnp.float32) * 0.1
    pw_weight = jax.random.normal(
        kpw, (out_channels, in_channels, 1, 1), dtype=jnp.float32) * 0.1

    out = separable_conv2d(x, dw_weight, pw_weight,
                           stride=stride, padding=padding, dilation=dilation)
    out = jax.block_until_ready(out)

    ref = _reference(x, dw_weight, pw_weight,
                     stride=stride, padding=padding, dilation=dilation)
    ref = jax.block_until_ready(ref)

    assert out.shape == ref.shape, (out.shape, ref.shape)
    assert jnp.allclose(out, ref, atol=1e-4, rtol=1e-4), float(
        jnp.max(jnp.abs(out - ref)))

    print("KERNEL_OK")
</pallas_src>

<mosaic_0001>
module attributes {stable_mosaic.version = 11 : i64} {
  func.func @_sepconv_kernel(%arg0: i32, %arg1: memref<1x8x512xf32, #tpu.memory_space<vmem>>, %arg2: memref<8x9xf32, #tpu.memory_space<vmem>>, %arg3: memref<16x8xf32, #tpu.memory_space<vmem>>, %arg4: memref<1x16x384xf32, #tpu.memory_space<vmem>>) attributes {dimension_semantics = [#tpu.dimension_semantics<parallel>], iteration_bounds = array<i64: 1>, scalar_prefetch = 0 : i64, scratch_operands = 0 : i64, tpu.core_type = #tpu.core_type<tc>, window_params = [{transform_indices = @transform_0, window_bounds = array<i64: 1, 8, 512>}, {pipeline_mode = #tpu.pipeline_mode<synchronous>, transform_indices = @transform_1, window_bounds = array<i64: 8, 9>}, {pipeline_mode = #tpu.pipeline_mode<synchronous>, transform_indices = @transform_2, window_bounds = array<i64: 16, 8>}, {transform_indices = @transform_3, window_bounds = array<i64: 1, 16, 384>}]} {
    %c0 = arith.constant 0 : index
    %c0_0 = arith.constant 0 : index
    %c0_1 = arith.constant 0 : index
    %0 = vector.load %arg1[%c0, %c0_0, %c0_1] : memref<1x8x512xf32, #tpu.memory_space<vmem>>, vector<1x8x384xf32>
    %1 = vector.shape_cast %0 : vector<1x8x384xf32> to vector<8x384xf32>
    %c0_2 = arith.constant 0 : index
    %c0_3 = arith.constant 0 : index
    %2 = vector.load %arg2[%c0_2, %c0_3] : memref<8x9xf32, #tpu.memory_space<vmem>>, vector<8x1xf32>
    %3 = vector.broadcast %2 : vector<8x1xf32> to vector<8x384xf32>
    %4 = arith.mulf %3, %1 : vector<8x384xf32>
    %c0_4 = arith.constant 0 : index
    %c0_5 = arith.constant 0 : index
    %c1 = arith.constant 1 : index
    %5 = vector.load %arg1[%c0_4, %c0_5, %c1] : memref<1x8x512xf32, #tpu.memory_space<vmem>>, vector<1x8x384xf32>
    %6 = vector.shape_cast %5 : vector<1x8x384xf32> to vector<8x384xf32>
    %c0_6 = arith.constant 0 : index
    %c1_7 = arith.constant 1 : index
    %7 = vector.load %arg2[%c0_6, %c1_7] : memref<8x9xf32, #tpu.memory_space<vmem>>, vector<8x1xf32>
    %8 = vector.broadcast %7 : vector<8x1xf32> to vector<8x384xf32>
    %9 = arith.mulf %8, %6 : vector<8x384xf32>
    %10 = arith.addf %4, %9 : vector<8x384xf32>
    %c0_8 = arith.constant 0 : index
    %c0_9 = arith.constant 0 : index
    %c2 = arith.constant 2 : index
    %11 = vector.load %arg1[%c0_8, %c0_9, %c2] : memref<1x8x512xf32, #tpu.memory_space<vmem>>, vector<1x8x384xf32>
    %12 = vector.shape_cast %11 : vector<1x8x384xf32> to vector<8x384xf32>
    %c0_10 = arith.constant 0 : index
    %c2_11 = arith.constant 2 : index
    %13 = vector.load %arg2[%c0_10, %c2_11] : memref<8x9xf32, #tpu.memory_space<vmem>>, vector<8x1xf32>
    %14 = vector.broadcast %13 : vector<8x1xf32> to vector<8x384xf32>
    %15 = arith.mulf %14, %12 : vector<8x384xf32>
    %16 = arith.addf %10, %15 : vector<8x384xf32>
    %c0_12 = arith.constant 0 : index
    %c0_13 = arith.constant 0 : index
    %c24 = arith.constant 24 : index
    %17 = vector.load %arg1[%c0_12, %c0_13, %c24] : memref<1x8x512xf32, #tpu.memory_space<vmem>>, vector<1x8x384xf32>
    %18 = vector.shape_cast %17 : vector<1x8x384xf32> to vector<8x384xf32>
    %c0_14 = arith.constant 0 : index
    %c3 = arith.constant 3 : index
    %19 = vector.load %arg2[%c0_14, %c3] : memref<8x9xf32, #tpu.memory_space<vmem>>, vector<8x1xf32>
    %20 = vector.broadcast %19 : vector<8x1xf32> to vector<8x384xf32>
    %21 = arith.mulf %20, %18 : vector<8x384xf32>
    %22 = arith.addf %16, %21 : vector<8x384xf32>
    %c0_15 = arith.constant 0 : index
    %c0_16 = arith.constant 0 : index
    %c25 = arith.constant 25 : index
    %23 = vector.load %arg1[%c0_15, %c0_16, %c25] : memref<1x8x512xf32, #tpu.memory_space<vmem>>, vector<1x8x384xf32>
    %24 = vector.shape_cast %23 : vector<1x8x384xf32> to vector<8x384xf32>
    %c0_17 = arith.constant 0 : index
    %c4 = arith.constant 4 : index
    %25 = vector.load %arg2[%c0_17, %c4] : memref<8x9xf32, #tpu.memory_space<vmem>>, vector<8x1xf32>
    %26 = vector.broadcast %25 : vector<8x1xf32> to vector<8x384xf32>
    %27 = arith.mulf %26, %24 : vector<8x384xf32>
    %28 = arith.addf %22, %27 : vector<8x384xf32>
    %c0_18 = arith.constant 0 : index
    %c0_19 = arith.constant 0 : index
    %c26 = arith.constant 26 : index
    %29 = vector.load %arg1[%c0_18, %c0_19, %c26] : memref<1x8x512xf32, #tpu.memory_space<vmem>>, vector<1x8x384xf32>
    %30 = vector.shape_cast %29 : vector<1x8x384xf32> to vector<8x384xf32>
    %c0_20 = arith.constant 0 : index
    %c5 = arith.constant 5 : index
    %31 = vector.load %arg2[%c0_20, %c5] : memref<8x9xf32, #tpu.memory_space<vmem>>, vector<8x1xf32>
    %32 = vector.broadcast %31 : vector<8x1xf32> to vector<8x384xf32>
    %33 = arith.mulf %32, %30 : vector<8x384xf32>
    %34 = arith.addf %28, %33 : vector<8x384xf32>
    %c0_21 = arith.constant 0 : index
    %c0_22 = arith.constant 0 : index
    %c48 = arith.constant 48 : index
    %35 = vector.load %arg1[%c0_21, %c0_22, %c48] : memref<1x8x512xf32, #tpu.memory_space<vmem>>, vector<1x8x384xf32>
    %36 = vector.shape_cast %35 : vector<1x8x384xf32> to vector<8x384xf32>
    %c0_23 = arith.constant 0 : index
    %c6 = arith.constant 6 : index
    %37 = vector.load %arg2[%c0_23, %c6] : memref<8x9xf32, #tpu.memory_space<vmem>>, vector<8x1xf32>
    %38 = vector.broadcast %37 : vector<8x1xf32> to vector<8x384xf32>
    %39 = arith.mulf %38, %36 : vector<8x384xf32>
    %40 = arith.addf %34, %39 : vector<8x384xf32>
    %c0_24 = arith.constant 0 : index
    %c0_25 = arith.constant 0 : index
    %c49 = arith.constant 49 : index
    %41 = vector.load %arg1[%c0_24, %c0_25, %c49] : memref<1x8x512xf32, #tpu.memory_space<vmem>>, vector<1x8x384xf32>
    %42 = vector.shape_cast %41 : vector<1x8x384xf32> to vector<8x384xf32>
    %c0_26 = arith.constant 0 : index
    %c7 = arith.constant 7 : index
    %43 = vector.load %arg2[%c0_26, %c7] : memref<8x9xf32, #tpu.memory_space<vmem>>, vector<8x1xf32>
    %44 = vector.broadcast %43 : vector<8x1xf32> to vector<8x384xf32>
    %45 = arith.mulf %44, %42 : vector<8x384xf32>
    %46 = arith.addf %40, %45 : vector<8x384xf32>
    %c0_27 = arith.constant 0 : index
    %c0_28 = arith.constant 0 : index
    %c50 = arith.constant 50 : index
    %47 = vector.load %arg1[%c0_27, %c0_28, %c50] : memref<1x8x512xf32, #tpu.memory_space<vmem>>, vector<1x8x384xf32>
    %48 = vector.shape_cast %47 : vector<1x8x384xf32> to vector<8x384xf32>
    %c0_29 = arith.constant 0 : index
    %c8 = arith.constant 8 : index
    %49 = vector.load %arg2[%c0_29, %c8] : memref<8x9xf32, #tpu.memory_space<vmem>>, vector<8x1xf32>
    %50 = vector.broadcast %49 : vector<8x1xf32> to vector<8x384xf32>
    %51 = arith.mulf %50, %48 : vector<8x384xf32>
    %52 = arith.addf %46, %51 : vector<8x384xf32>
    %c0_30 = arith.constant 0 : index
    %c0_31 = arith.constant 0 : index
    %53 = vector.load %arg3[%c0_30, %c0_31] : memref<16x8xf32, #tpu.memory_space<vmem>>, vector<16x8xf32>
    %cst = arith.constant dense<0.000000e+00> : vector<16x384xf32>
    %54 = tpu.matmul %53, %52, %cst {dimension_numbers = #tpu.dot_dimension_numbers<[1], [0], [0], [1], [0, 0, 1, 1], [], []>} : vector<16x8xf32>, vector<8x384xf32>, vector<16x384xf32> -> vector<16x384xf32>
    %c0_32 = arith.constant 0 : index
    %c0_33 = arith.constant 0 : index
    %c0_34 = arith.constant 0 : index
    %55 = vector.load %arg4[%c0_32, %c0_33, %c0_34] : memref<1x16x384xf32, #tpu.memory_space<vmem>>, vector<1x16x384xf32>
    %56 = vector.shape_cast %55 : vector<1x16x384xf32> to vector<16x384xf32>
    %57 = vector.shape_cast %54 : vector<16x384xf32> to vector<1x16x384xf32>
    tpu.vector_store %arg4[%c0_32, %c0_33, %c0_34], %57 {strides = array<i32>} : memref<1x16x384xf32, #tpu.memory_space<vmem>>, vector<1x16x384xf32>,
    return
  }
  func.func @transform_0(%arg0: i32) -> (i32, i32, i32) {
    %c0_i32 = arith.constant 0 : i32
    %c0_i32_0 = arith.constant 0 : i32
    %c0_i32_1 = arith.constant 0 : i32
    return %arg0, %c0_i32, %c0_i32_0 : i32, i32, i32
  }
  func.func @transform_1(%arg0: i32) -> (i32, i32) {
    %c0_i32 = arith.constant 0 : i32
    %c0_i32_0 = arith.constant 0 : i32
    %c0_i32_1 = arith.constant 0 : i32
    return %c0_i32, %c0_i32_0 : i32, i32
  }
  func.func @transform_2(%arg0: i32) -> (i32, i32) {
    %c0_i32 = arith.constant 0 : i32
    %c0_i32_0 = arith.constant 0 : i32
    %c0_i32_1 = arith.constant 0 : i32
    return %c0_i32, %c0_i32_0 : i32, i32
  }
  func.func @transform_3(%arg0: i32) -> (i32, i32, i32) {
    %c0_i32 = arith.constant 0 : i32
    %c0_i32_0 = arith.constant 0 : i32
    %c0_i32_1 = arith.constant 0 : i32
    return %arg0, %c0_i32, %c0_i32_0 : i32, i32, i32
  }
}

</mosaic_0001>

<bundles_post_ra>
// kernel: tpu_custom_call.1
= control target key start
LH: loop header
LB: loop body
LE: loop exit
PB: predicated region body
PF: predicated region fallthrough
CT: control target
= control target key end

     0   :  { %8 = vsyncpa [#allocation3], 0  ;;  %s711_s0 = inlined_call_operand.hbm [shape: f32[1,8,512], index: 0, kind: input, shape index: {}]   ;;  %s712_s1 = inlined_call_operand.vmem [shape: f32[8,9], index: 1, kind: input, shape index: {}]   ;;  %s713_s2 = inlined_call_operand.vmem [shape: f32[16,8], index: 2, kind: input, shape index: {}]   ;;  %s714_s3 = inlined_call_operand.hbm [shape: f32[1,16,384], index: 3, kind: output, shape index: {}]  }
   0x1   :  { %9 = vsyncpa [#allocation4], 0  ;;  %s559_s12 = smov [#allocation2]   ;;  %s511_s16 = scalar_lea.hbm %s711_s0, 512 }
   0x2   :  { %s16_s13 = sshll.u32 %s559_s12, 4  ;;  %p512_p0 = scmp.ne.s32.totalorder %s711_s0, %s511_s16  ;;  %s17_s13 = int_to_ptr.vmem [resolvable:$true] %s16_s13 }
   0x3   :  { %p515_p1 = scmp.lt.u32.totalorder %s511_s16, %s711_s0 }
   0x5   :  { %p517_p2 = pnand %p515_p1, %p512_p0 }
   0x7   :  { %520 = shalt.err (!%p517_p2)
}
   0x8   :  { %s521_s21 = scalar_lea.vmem %s17_s13, 512  ;;  %p526_p4 = scmp.lt.s32.totalorder %s17_s13, %s17_s13 }
   0x9   :  { %p522_p3 = scmp.ne.s32.totalorder %s17_s13, %s521_s21  ;;  %p527_p5 = scmp.lt.s32.totalorder %s521_s21, %s521_s21 }
   0xb   :  { %p528_p6 = por %p527_p5, %p526_p4 }
   0xd   :  { %p529_p7 = pnand %p528_p6, %p522_p3 }
   0xf   :  { %532 = shalt.err (!%p529_p7)
}
  0x10   :  { %19 = dma.hbm_to_vmem [thread:$0]  %s711_s0, 512, %s17_s13, [#allocation3]  }
  0x11   :  { %555 = dma.done.wait [#allocation3], 512  }
  0x12   :  { %556 = vsyncadd [#allocation3], 4294966784  ;;  %v560_v0 = vmov 1   ;;  %v561_v1 = vmov 3   ;;  %v30_v2 = vld [vmem:[%s712_s1] sm:$0xff]  ;;  %v562_v3 = vmov 2  }
  0x13   :  { %501 = vset.pattern.permute.xlu0 %v560_v0  ;;  %503 = vset.pattern.permute.xlu1 %v561_v1  ;;  %v563_v4 = vmov 4   ;;  %v564_v5 = vmov 5   ;;  %v565_v6 = vmov 6   ;;  %v566_v7 = vmov 7   ;;  %v616_v10 = vld [vmem:[#allocation2 + $0x8] sm:$0xff]  ;;  %v618_v11 = vld [vmem:[#allocation2] sm:$0xff] }
  0x14   :  { %44 = vperm.xlu0 %501, %v30_v2   ;;  %104 = vperm.xlu1 %503, %v30_v2   ;;  %v567_v8 = vmov 0   ;;  %v568_v9 = vmov 8   ;;  %v622_v15 = vld [vmem:[#allocation2 + $0x10] sm:$0xff]  ;;  %s569_s0 = smov 127   ;;  %v627_v20 = vld [vmem:[#allocation2 + $0x18] sm:$0xff]  ;;  %s570_s1 = smov 126  }
  0x15   :  { %s571_s26 = smov 104   ;;  %s572_s27 = smov 103   ;;  %v576_v48 = vmov 0.0   ;;  %v656_v51 = vld [vmem:[%s713_s2] sm:$0xff]  ;;  %vm285_vm0 = vcmask 64512   ;;  %vm63_vm1 = vcmask 1039360  }
  0x16   :  { %s573_s28 = smov 102   ;;  %s574_s29 = smov 80   ;;  %356 = vmatprep.mubr.f32.mxu0 %v576_v48  ;;  %476 = vmatprep.mubr.msk.f32.mxu1 %vm285_vm0, %v656_v51  ;;  %vm93_vm2 = vcmask 1031168   ;;  %vm123_vm3 = vcmask 850944   ;;  %vm153_vm4 = vcmask 842752   ;;  %vm183_vm5 = vcmask 834560  }
  0x17   :  { %s575_s30 = smov 79   ;;  %s577_s6 = smov 78   ;;  %vm213_vm6 = vcmask 654336   ;;  %vm243_vm7 = vcmask 646144   ;;  %vm273_vm8 = vcmask 637952  }
  0x18   :  { %502 = vset.pattern.permute.xlu0 %v562_v3  ;;  %504 = vset.pattern.permute.xlu1 %v563_v4  ;;  %s578_s9 = smov [#allocation5]  }
  0x19   :  { %74 = vperm.xlu0 %502, %v30_v2   ;;  %134 = vperm.xlu1 %504, %v30_v2   ;;  %s455_s10 = sshll.u32 %s578_s9, 4  ;;  %s456_s10 = int_to_ptr.vmem [resolvable:$true] %s455_s10 }
  0x1a   :  { %p538_p9 = scmp.lt.s32.totalorder %s456_s10, %s456_s10 }
  0x1d   :  { %505 = vset.pattern.permute.xlu1 %v564_v5  ;;  %506 = vset.pattern.permute.xlu0 %v565_v6 }
  0x1e   :  { %164 = vperm.xlu1 %505, %v30_v2   ;;  %194 = vperm.xlu0 %506, %v30_v2  }
  0x22   :  { %507 = vset.pattern.permute.xlu1 %v566_v7  ;;  %509 = vset.pattern.permute.xlu0 %v567_v8 }
  0x23   :  { %224 = vperm.xlu1 %507, %v30_v2   ;;  %33 = vperm.xlu0 %509, %v30_v2  }
  0x27   :  { %508 = vset.pattern.permute.xlu1 %v568_v9  ;;  %510 = vset.pattern.permute.xlu0 %v568_v9 }
  0x28   :  { %254 = vperm.xlu1 %508, %v30_v2  }
  0x93   :  { %v45_v12 = vpop.permute.xlu0 %44  ;;  %v105_v21 = vpop.permute.xlu1 %104 }
  0x94   :  { %v48_v13 = vmul.f32 %v45_v12, %v616_v10  ;;  %v47_v14 = vmul.f32 %v45_v12, %v618_v11  ;;  %v49_v17 = vmul.f32 %v45_v12, %v622_v15  ;;  %v50_v22 = vmul.f32 %v45_v12, %v627_v20 }
  0x95   :  { %v109_v23 = vmul.f32 %v105_v21, %v622_v15  ;;  %v108_v25 = vmul.f32 %v105_v21, %v616_v10  ;;  %v107_v29 = vmul.f32 %v105_v21, %v618_v11  ;;  %v110_v32 = vmul.f32 %v105_v21, %v627_v20 }
  0x96   :  { %57 = vrot.lane.b32.xlu1 %v48_v13, %s569_s0  ;;  %55 = vrot.lane.b32.xlu0 %v47_v14, %s569_s0 }
  0x98   :  { %v75_v16 = vpop.permute.xlu0 %74  ;;  %v135_v26 = vpop.permute.xlu1 %134 }
  0x99   :  { %v79_v18 = vmul.f32 %v75_v16, %v622_v15  ;;  %v78_v19 = vmul.f32 %v75_v16, %v616_v10  ;;  %v77_v24 = vmul.f32 %v75_v16, %v618_v11  ;;  %v80_v27 = vmul.f32 %v75_v16, %v627_v20 }
  0x9a   :  { %59 = vrot.lane.b32.xlu1 %v49_v17, %s569_s0  ;;  %v139_v28 = vmul.f32 %v135_v26, %v622_v15  ;;  %v138_v30 = vmul.f32 %v135_v26, %v616_v10  ;;  %v137_v34 = vmul.f32 %v135_v26, %v618_v11  ;;  %v140_v37 = vmul.f32 %v135_v26, %v627_v20 }
  0x9b   :  { %89 = vrot.lane.b32.xlu0 %v79_v18, %s570_s1 }
  0x9d   :  { %v165_v31 = vpop.permute.xlu1 %164  ;;  %v195_v36 = vpop.permute.xlu0 %194 }
  0x9e   :  { %87 = vrot.lane.b32.xlu1 %v78_v19, %s570_s1  ;;  %v169_v33 = vmul.f32 %v165_v31, %v622_v15  ;;  %v168_v35 = vmul.f32 %v165_v31, %v616_v10  ;;  %v199_v38 = vmul.f32 %v195_v36, %v622_v15  ;;  %v167_v39 = vmul.f32 %v165_v31, %v618_v11 }
  0x9f   :  { %61 = vrot.lane.b32.xlu0 %v50_v22, %s569_s0  ;;  %v198_v40 = vmul.f32 %v195_v36, %v616_v10  ;;  %v170_v42 = vmul.f32 %v165_v31, %v627_v20  ;;  %v197_v44 = vmul.f32 %v195_v36, %v618_v11  ;;  %v200_v47 = vmul.f32 %v195_v36, %v627_v20 }
  0xa2   :  { %85 = vrot.lane.b32.xlu1 %v77_v24, %s570_s1  ;;  %v225_v41 = vpop.permute.xlu1 %224  ;;  %v34_v56 = vpop.permute.xlu0 %33 }
  0xa3   :  { %119 = vrot.lane.b32.xlu0 %v109_v23, %s571_s26  ;;  %v229_v43 = vmul.f32 %v225_v41, %v622_v15  ;;  %v228_v45 = vmul.f32 %v225_v41, %v616_v10  ;;  %v227_v50 = vmul.f32 %v225_v41, %v618_v11  ;;  %v230_v53 = vmul.f32 %v225_v41, %v627_v20 }
  0xa4   :  { %v37_v16 = vmul.f32 %v616_v10, %v34_v56  ;;  %v36_v21 = vmul.f32 %v618_v11, %v34_v56 }
  0xa6   :  { %117 = vrot.lane.b32.xlu1 %v108_v25, %s571_s26 }
  0xa7   :  { %91 = vrot.lane.b32.xlu0 %v80_v27, %s570_s1  ;;  %v255_v46 = vpop.permute.xlu1 %254 }
  0xa8   :  { %v259_v49 = vmul.f32 %v255_v46, %v622_v15  ;;  %v258_v52 = vmul.f32 %v255_v46, %v616_v10  ;;  %v257_v54 = vmul.f32 %v255_v46, %v618_v11  ;;  %v260_v55 = vmul.f32 %v255_v46, %v627_v20 }
  0xaa   :  { %115 = vrot.lane.b32.xlu1 %v107_v29, %s571_s26 }
  0xab   :  { %149 = vrot.lane.b32.xlu0 %v139_v28, %s572_s27 }
  0xae   :  { %147 = vrot.lane.b32.xlu1 %v138_v30, %s572_s27 }
  0xaf   :  { %121 = vrot.lane.b32.xlu0 %v110_v32, %s571_s26 }
  0xb2   :  { %145 = vrot.lane.b32.xlu1 %v137_v34, %s572_s27 }
  0xb3   :  { %179 = vrot.lane.b32.xlu0 %v169_v33, %s573_s28 }
  0xb6   :  { %177 = vrot.lane.b32.xlu1 %v168_v35, %s573_s28  ;;  %v38_v35 = vmul.f32 %v622_v15, %v34_v56 }
  0xb7   :  { %151 = vrot.lane.b32.xlu0 %v140_v37, %s572_s27 }
  0xba   :  { %175 = vrot.lane.b32.xlu1 %v167_v39, %s573_s28 }
  0xbb   :  { %209 = vrot.lane.b32.xlu0 %v199_v38, %s574_s29 }
  0xbe   :  { %207 = vrot.lane.b32.xlu1 %v198_v40, %s574_s29 }
  0xbf   :  { %181 = vrot.lane.b32.xlu0 %v170_v42, %s573_s28 }
  0xc2   :  { %205 = vrot.lane.b32.xlu1 %v197_v44, %s574_s29 }
  0xc3   :  { %239 = vrot.lane.b32.xlu0 %v229_v43, %s575_s30 }
  0xc6   :  { %237 = vrot.lane.b32.xlu1 %v228_v45, %s575_s30 }
  0xc7   :  { %211 = vrot.lane.b32.xlu0 %v200_v47, %s574_s29 }
  0xca   :  { %235 = vrot.lane.b32.xlu1 %v227_v50, %s575_s30 }
  0xcb   :  { %269 = vrot.lane.b32.xlu0 %v259_v49, %s577_s6 }
  0xce   :  { %267 = vrot.lane.b32.xlu1 %v258_v52, %s577_s6 }
  0xcf   :  { %241 = vrot.lane.b32.xlu0 %v230_v53, %s575_s30 }
  0xd2   :  { %265 = vrot.lane.b32.xlu1 %v257_v54, %s577_s6 }
  0xd6   :  { %271 = vrot.lane.b32.xlu1 %v260_v55, %s577_s6 }
 0x108   :  { %v58_v57 = vpop.permute.xlu1 %57  ;;  %v56_v58 = vpop.permute.xlu0 %55 }
 0x109   :  { %v64_v24 = vsel %vm63_vm1, %v56_v58, %v58_v57 }
 0x10a   :  { %v70_v29 = vadd.f32 %v64_v24, %v36_v21 }
 0x10c   :  { %v60_v59 = vpop.permute.xlu1 %59 }
 0x10d   :  { %v90_v60 = vpop.permute.xlu0 %89  ;;  %v65_v18 = vsel %vm63_vm1, %v58_v57, %v60_v59 }
 0x10e   :  { %v71_v22 = vadd.f32 %v65_v18, %v37_v16 }
 0x110   :  { %v88_v61 = vpop.permute.xlu1 %87 }
 0x111   :  { %v62_v62 = vpop.permute.xlu0 %61  ;;  %v95_v20 = vsel %vm93_vm2, %v88_v61, %v90_v60 }
 0x112   :  { %v101_v10 = vadd.f32 %v95_v20, %v71_v22  ;;  %v66_v11 = vsel %vm63_vm1, %v60_v59, %v62_v62 }
 0x113   :  { %v72_v41 = vadd.f32 %v66_v11, %v38_v35 }
 0x114   :  { %v86_v63 = vpop.permute.xlu1 %85 }
 0x115   :  { %v120_v0 = vpop.permute.xlu0 %119  ;;  %v94_v27 = vsel %vm93_vm2, %v86_v63, %v88_v61 }
 0x116   :  { %v100_v36 = vadd.f32 %v94_v27, %v70_v29 }
 0x118   :  { %v118_v1 = vpop.permute.xlu1 %117 }
 0x119   :  { %v92_v2 = vpop.permute.xlu0 %91  ;;  %v125_v25 = vsel %vm123_vm3, %v118_v1, %v120_v0 }
 0x11a   :  { %v131_v30 = vadd.f32 %v125_v25, %v101_v10  ;;  %v96_v38 = vsel %vm93_vm2, %v90_v60, %v92_v2 }
 0x11b   :  { %v102_v49 = vadd.f32 %v96_v38, %v72_v41 }
 0x11c   :  { %v116_v3 = vpop.permute.xlu1 %115 }
 0x11d   :  { %v150_v4 = vpop.permute.xlu0 %149  ;;  %v124_v32 = vsel %vm123_vm3, %v116_v3, %v118_v1 }
 0x11e   :  { %v130_v42 = vadd.f32 %v124_v32, %v100_v36 }
 0x120   :  { %v148_v5 = vpop.permute.xlu1 %147 }
 0x121   :  { %v122_v6 = vpop.permute.xlu0 %121  ;;  %v155_v28 = vsel %vm153_vm4, %v148_v5, %v150_v4 }
 0x122   :  { %v161_v37 = vadd.f32 %v155_v28, %v131_v30  ;;  %v126_v45 = vsel %vm123_vm3, %v120_v0, %v122_v6 }
 0x123   :  { %v132_v55 = vadd.f32 %v126_v45, %v102_v49 }
 0x124   :  { %v146_v7 = vpop.permute.xlu1 %145 }
 0x125   :  { %v180_v8 = vpop.permute.xlu0 %179  ;;  %v154_v39 = vsel %vm153_vm4, %v146_v7, %v148_v5 }
 0x126   :  { %v160_v50 = vadd.f32 %v154_v39, %v130_v42 }
 0x128   :  { %v178_v9 = vpop.permute.xlu1 %177 }
 0x129   :  { %v152_v12 = vpop.permute.xlu0 %151  ;;  %v185_v33 = vsel %vm183_vm5, %v178_v9, %v180_v8 }
 0x12a   :  { %v191_v43 = vadd.f32 %v185_v33, %v161_v37  ;;  %v156_v53 = vsel %vm153_vm4, %v150_v4, %v152_v12 }
 0x12b   :  { %v162_v62 = vadd.f32 %v156_v53, %v132_v55 }
 0x12c   :  { %v176_v13 = vpop.permute.xlu1 %175 }
 0x12d   :  { %v210_v14 = vpop.permute.xlu0 %209  ;;  %v184_v46 = vsel %vm183_vm5, %v176_v13, %v178_v9 }
 0x12e   :  { %v190_v56 = vadd.f32 %v184_v46, %v160_v50 }
 0x130   :  { %v208_v17 = vpop.permute.xlu1 %207 }
 0x131   :  { %v182_v19 = vpop.permute.xlu0 %181  ;;  %v215_v40 = vsel %vm213_vm6, %v208_v17, %v210_v14 }
 0x132   :  { %v221_v52 = vadd.f32 %v215_v40, %v191_v43  ;;  %v186_v59 = vsel %vm183_vm5, %v180_v8, %v182_v19 }
 0x133   :  { %v192_v3 = vadd.f32 %v186_v59, %v162_v62 }
 0x134   :  { %v206_v23 = vpop.permute.xlu1 %205 }
 0x135   :  { %v240_v26 = vpop.permute.xlu0 %239  ;;  %v214_v54 = vsel %vm213_vm6, %v206_v23, %v208_v17  ;;  %v284_v17 = vld [vmem:[%s713_s2 + $0x8] sm:$0xff]  ;;  %s533_s2 = scalar_lea.vmem %s456_s10, 768 }
 0x136   :  { %v220_v63 = vadd.f32 %v214_v54, %v190_v56  ;;  %p534_p8 = scmp.ne.s32.totalorder %s456_s10, %s533_s2  ;;  %p539_p10 = scmp.lt.s32.totalorder %s533_s2, %s533_s2 }
 0x138   :  { %v238_v31 = vpop.permute.xlu1 %237  ;;  %p540_p11 = por %p539_p10, %p538_p9 }
 0x139   :  { %v212_v34 = vpop.permute.xlu0 %211  ;;  %v245_v47 = vsel %vm243_vm7, %v238_v31, %v240_v26 }
 0x13a   :  { %v251_v58 = vadd.f32 %v245_v47, %v221_v52  ;;  %v216_v2 = vsel %vm213_vm6, %v210_v14, %v212_v34  ;;  %p541_p12 = pnand %p540_p11, %p534_p8 }
 0x13b   :  { %v222_v9 = vadd.f32 %v216_v2, %v192_v3 }
 0x13c   :  { %v236_v44 = vpop.permute.xlu1 %235 }
 0x13d   :  { %v270_v15 = vpop.permute.xlu0 %269  ;;  %v244_v60 = vsel %vm243_vm7, %v236_v44, %v238_v31 }
 0x13e   :  { %v250_v4 = vadd.f32 %v244_v60, %v220_v63 }
 0x140   :  { %v268_v57 = vpop.permute.xlu1 %267 }
 0x141   :  { %v275_v61 = vsel %vm273_vm8, %v268_v57, %v270_v15  ;;  %v242_v0 = vpop.permute.xlu0 %241 }
 0x142   :  { %v281_v1 = vadd.f32 %v275_v61, %v251_v58  ;;  %v246_v6 = vsel %vm243_vm7, %v240_v26, %v242_v0 }
 0x143   :  { %v252_v12 = vadd.f32 %v246_v6, %v222_v9 }
 0x144   :  { %v266_v5 = vpop.permute.xlu1 %265  ;;  %292 = vmatprep.subr.mxu0 %v281_v1 }
 0x145   :  { %v274_v7 = vsel %vm273_vm8, %v266_v5, %v268_v57 }
 0x146   :  { %v280_v8 = vadd.f32 %v274_v7, %v250_v4 }
 0x148   :  { %v272_v13 = vpop.permute.xlu1 %271  ;;  %293 = vmatpush1.msra.mxu0 %v280_v8 }
 0x149   :  { %v276_v16 = vsel %vm273_vm8, %v270_v15, %v272_v13  ;;  %467 = vmatmul.mubr.msk.f32.vlgmr.msra.gmra.mrb[0].mxu0 %vm285_vm0, %v656_v51 }
 0x14a   :  { %362 = vmatprep.mubr.f32.mxu0 %v576_v48  ;;  %v282_v14 = vadd.f32 %v276_v16, %v252_v12 }
 0x14c   :  { %474 = vmatprep.subr.mxu1 %v282_v14 }
 0x14d   :  { %468 = vmatmul.mubr.msk.f32.gmra.mrb[2].mxu0 %vm285_vm0, %v284_v17  ;;  %475 = vmatpush3.msra.mxu1 %v282_v14 }
 0x14e   :  { %477 = vmatmul.mubr.msk.f32.vlgmr.msra.gmra.mrb[0].mxu1 %vm285_vm0, %v284_v17 }
 0x21c   :  { %v358_v18 = vpop.f32.mrb[0].mxu0 }
 0x21d   :  { %444 = vst [vmem:[#allocation5] sm:$0xff] %v358_v18  ;;  %v360_v19 = vpop.f32.mrb[1].mxu0 }
 0x21e   :  { %445 = vst [vmem:[#allocation5 + $0x8] sm:$0xff] %v360_v19 }
 0x220   :  { %v364_v51 = vpop.f32.mrb[2].mxu0 }
 0x221   :  { %447 = vst [vmem:[#allocation5 + $0x18] sm:$0xff] %v364_v51  ;;  %v366_v48 = vpop.f32.mrb[3].mxu0  ;;  %v478_v20 = vpop.f32.mrb[0].mxu1 }
 0x222   :  { %448 = vst [vmem:[#allocation5 + $0x20] sm:$0xff] %v366_v48  ;;  %449 = vst [vmem:[#allocation5 + $0x28] sm:$0xff] %v478_v20  ;;  %v435_v21 = vpop.f32.mrb[1].mxu1 }
 0x223   :  { %446 = vst [vmem:[#allocation5 + $0x10] sm:$0xff] %v435_v21 }
 0x224   :  { %544 = shalt.err (!%p541_p12)
}
 0x225   :  { %s545_s13 = scalar_lea.hbm %s714_s3, 768 }
 0x226   :  { %p546_p13 = scmp.ne.s32.totalorder %s714_s3, %s545_s13  ;;  %p549_p0 = scmp.lt.u32.totalorder %s545_s13, %s714_s3 }
 0x228   :  { %p551_p1 = pnand %p549_p0, %p546_p13 }
 0x22a   :  { %554 = shalt.err (!%p551_p1)
}
 0x22b   :  { %s579_s18 = smov 384   ;;  %s580_s19 = smov 24  }
 0x22c   :  { %461 = dma.vmem_to_hbm [thread:$0]  %s456_s10, 768, %s714_s3, [#allocation4], %s579_s18, %s579_s18, %s580_s19  }
 0x22d   :  { %557 = dma.done.wait [#allocation4], 768  }
 0x22e   :  { %558 = vsyncadd [#allocation4], 4294966528 }
 0x22f   :  { %465 = vsyncpa [#allocation3], 1 }
 0x230   :  { %466 = vsyncpa [#allocation4], 1 }

</bundles_post_ra>
